<compile_context>
chip_gen: v7x
topology: tpu7x:2x2x1
jax: 0.10.0
libtpu: 0.0.40
codegen_flags: <defaults>
</compile_context>

<pallas_src>
import jax
import jax.numpy as jnp
from jax.experimental import pallas as pl
from jax.experimental.pallas import tpu as pltpu


def _embed_fc_kernel(ids_ref, embed_hbm, w_ref, b_ref, out_ref, emb_scratch, sems):
    """Gather TILE_TOK embedding rows from HBM, then Linear on the MXU."""
    i = pl.program_id(0)
    tile = emb_scratch.shape[0]

    # Issue all row-gather DMAs for this token tile, then wait on all of them.
    copies = []
    for t in range(tile):
        tok = ids_ref[i * tile + t]
        cp = pltpu.make_async_copy(
            embed_hbm.at[pl.ds(tok, 1), :],
            emb_scratch.at[pl.ds(t, 1), :],
            sems.at[t],
        )
        cp.start()
        copies.append(cp)
    for cp in copies:
        cp.wait()

    # (tile, E) @ (E, wd_pad) + bias — lane-dense (128-wide) output store.
    out_ref[...] = (
        jnp.dot(emb_scratch[...], w_ref[...], preferred_element_type=jnp.float32)
        + b_ref[...]
    ).astype(out_ref.dtype)


def _embed_only_kernel(ids_ref, embed_hbm, out_ref, gather_scratch, sems):
    """Plain embedding lookup (we_parameter is None path): pure row gather."""
    i = pl.program_id(0)
    tile = gather_scratch.shape[0]

    copies = []
    for t in range(tile):
        tok = ids_ref[i * tile + t]
        cp = pltpu.make_async_copy(
            embed_hbm.at[pl.ds(tok, 1), :],
            gather_scratch.at[pl.ds(t, 1), :],
            sems.at[t],
        )
        cp.start()
        copies.append(cp)
    for cp in copies:
        cp.wait()

    out_ref[...] = gather_scratch[...]


def word_embedding_forward(ids, embed_table, fc_w=None, fc_b=None, *, tile_tok=8):
    """ids: (B, S) int32.  embed_table: (V, E).  fc_w: (E, word_dim), fc_b: (word_dim,)."""
    B, S = ids.shape
    n_tok = B * S
    ids_flat = ids.reshape(n_tok).astype(jnp.int32)
    V, E = embed_table.shape

    # Pad token count to a multiple of the tile (pad tokens use id 0; rows sliced off).
    n_pad = pl.cdiv(n_tok, tile_tok) * tile_tok
    if n_pad != n_tok:
        ids_flat = jnp.pad(ids_flat, (0, n_pad - n_tok))
    n_tiles = n_pad // tile_tok

    if fc_w is not None:
        word_dim = fc_w.shape[1]
        # Lane-dense output: pad the Linear out-dim up to a multiple of 128.
        wd_pad = pl.cdiv(word_dim, 128) * 128
        w_padded = jnp.zeros((E, wd_pad), jnp.float32).at[:, :word_dim].set(
            fc_w.astype(jnp.float32))
        b_padded = jnp.zeros((1, wd_pad), jnp.float32).at[:, :word_dim].set(
            fc_b.astype(jnp.float32))

        out_flat = pl.pallas_call(
            _embed_fc_kernel,
            out_shape=jax.ShapeDtypeStruct((n_pad, wd_pad), jnp.float32),
            grid_spec=pltpu.PrefetchScalarGridSpec(
                num_scalar_prefetch=1,
                grid=(n_tiles,),
                in_specs=[
                    pl.BlockSpec(memory_space=pl.ANY),                 # table stays in HBM
                    pl.BlockSpec((E, wd_pad), lambda i, ids: (0, 0)),  # resident W
                    pl.BlockSpec((1, wd_pad), lambda i, ids: (0, 0)),  # resident bias
                ],
                out_specs=pl.BlockSpec((tile_tok, wd_pad), lambda i, ids: (i, 0)),
                scratch_shapes=[
                    pltpu.VMEM((tile_tok, E), jnp.float32),
                    pltpu.SemaphoreType.DMA((tile_tok,)),
                ],
            ),
            compiler_params=pltpu.CompilerParams(
                dimension_semantics=("parallel",),  # shard token tiles across TCs (v7x)
            ),
        )(ids_flat, embed_table.astype(jnp.float32), w_padded, b_padded)
        return out_flat[:n_tok, :word_dim].reshape(B, S, word_dim)
    else:
        word_dim = E
        out_flat = pl.pallas_call(
            _embed_only_kernel,
            out_shape=jax.ShapeDtypeStruct((n_pad, word_dim), jnp.float32),
            grid_spec=pltpu.PrefetchScalarGridSpec(
                num_scalar_prefetch=1,
                grid=(n_tiles,),
                in_specs=[pl.BlockSpec(memory_space=pl.ANY)],          # table stays in HBM
                out_specs=pl.BlockSpec((tile_tok, word_dim), lambda i, ids: (i, 0)),
                scratch_shapes=[
                    pltpu.VMEM((tile_tok, word_dim), jnp.float32),
                    pltpu.SemaphoreType.DMA((tile_tok,)),
                ],
            ),
            compiler_params=pltpu.CompilerParams(
                dimension_semantics=("parallel",),
            ),
        )(ids_flat, embed_table.astype(jnp.float32))
        return out_flat[:n_tok].reshape(B, S, word_dim)


if __name__ == "__main__":
    key = jax.random.PRNGKey(0)
    k_we, k_w, k_b, k_ids, k_emb2 = jax.random.split(key, 5)

    # Small shapes consistent with the module.
    vocab_size = 64
    word_dim = 32
    B, S = 2, 8

    # ---- we_parameter path: embed -> (B,S,300) -> Linear(300, word_dim) ----
    we_parameter = jax.random.normal(k_we, (vocab_size, 300), dtype=jnp.float32) * 0.1
    # Deterministic Linear init (stand-in for torch's default init).
    fc_w = jax.random.uniform(k_w, (300, word_dim), jnp.float32, -0.05, 0.05)
    fc_b = jax.random.uniform(k_b, (word_dim,), jnp.float32, -0.05, 0.05)

    ids = jax.random.randint(k_ids, (B, S), 0, vocab_size, dtype=jnp.int32)

    out = word_embedding_forward(ids, we_parameter, fc_w, fc_b)
    out = jax.block_until_ready(out)
    ref = jnp.take(we_parameter, ids.reshape(-1), axis=0).reshape(B, S, 300) @ fc_w + fc_b
    assert out.shape == (B, S, word_dim)
    assert jnp.allclose(out, ref, atol=1e-5, rtol=1e-5)

    # ---- we_parameter is None path: plain embedding, uniform(-0.1, 0.1) init ----
    embed2 = jax.random.uniform(k_emb2, (vocab_size, word_dim), jnp.float32, -0.1, 0.1)
    out2 = word_embedding_forward(ids, embed2)
    out2 = jax.block_until_ready(out2)
    ref2 = jnp.take(embed2, ids.reshape(-1), axis=0).reshape(B, S, word_dim)
    assert jnp.allclose(out2, ref2, atol=1e-6)

    print("KERNEL_OK")
</pallas_src>

<mosaic_0001>
module attributes {stable_mosaic.version = 11 : i64} {
  func.func @_embed_fc_kernel(%arg0: i32, %arg1: memref<16xi32, #tpu.memory_space<smem>>, %arg2: memref<64x300xf32, #tpu.memory_space<any>>, %arg3: memref<300x128xf32, #tpu.memory_space<vmem>>, %arg4: memref<1x128xf32, #tpu.memory_space<vmem>>, %arg5: memref<8x128xf32, #tpu.memory_space<vmem>>, %arg6: memref<8x300xf32, #tpu.memory_space<vmem>>, %arg7: memref<8x!tpu.dma_semaphore, #tpu.memory_space<semaphore_mem>>) attributes {dimension_semantics = [#tpu.dimension_semantics<parallel>], iteration_bounds = array<i64: 2>, scalar_prefetch = 1 : i64, scratch_operands = 2 : i64, tpu.core_type = #tpu.core_type<tc>, window_params = [{}, {pipeline_mode = #tpu.pipeline_mode<synchronous>, transform_indices = @transform_1, window_bounds = array<i64: 300, 128>}, {pipeline_mode = #tpu.pipeline_mode<synchronous>, transform_indices = @transform_2, window_bounds = array<i64: 1, 128>}, {transform_indices = @transform_3, window_bounds = array<i64: 8, 128>}]} {
    %c8_i32 = arith.constant 8 : i32
    %0 = arith.muli %arg0, %c8_i32 : i32
    %c0_i32 = arith.constant 0 : i32
    %1 = arith.addi %0, %c0_i32 : i32
    %2 = arith.index_cast %1 : i32 to index
    %3 = memref.load %arg1[%2] : memref<16xi32, #tpu.memory_space<smem>>
    %c0_i32_0 = arith.constant 0 : i32
    %c0_i32_1 = arith.constant 0 : i32
    %4 = tpu.memref_slice %arg2[%3, %c0_i32_1] : memref<64x300xf32, #tpu.memory_space<any>> -> memref<1x300xf32, #tpu.memory_space<any>>
    %c0_i32_2 = arith.constant 0 : i32
    %c0_i32_3 = arith.constant 0 : i32
    %5 = tpu.memref_slice %arg6[%c0_i32_2, %c0_i32_3] : memref<8x300xf32, #tpu.memory_space<vmem>> -> memref<1x300xf32, #tpu.memory_space<vmem>>
    %6 = tpu.memref_slice %arg7[%c0_i32_0] : memref<8x!tpu.dma_semaphore, #tpu.memory_space<semaphore_mem>> -> memref<1x!tpu.dma_semaphore, #tpu.memory_space<semaphore_mem>>
    %7 = tpu.memref_squeeze %6 : memref<1x!tpu.dma_semaphore, #tpu.memory_space<semaphore_mem>> -> memref<!tpu.dma_semaphore, #tpu.memory_space<semaphore_mem>>
    tpu.enqueue_dma source(%4 : memref<1x300xf32, #tpu.memory_space<any>>) target(%5 : memref<1x300xf32, #tpu.memory_space<vmem>>) target_semaphore(%7 : memref<!tpu.dma_semaphore, #tpu.memory_space<semaphore_mem>>)
    %c8_i32_4 = arith.constant 8 : i32
    %8 = arith.muli %arg0, %c8_i32_4 : i32
    %c1_i32 = arith.constant 1 : i32
    %9 = arith.addi %8, %c1_i32 : i32
    %10 = arith.index_cast %9 : i32 to index
    %11 = memref.load %arg1[%10] : memref<16xi32, #tpu.memory_space<smem>>
    %c1_i32_5 = arith.constant 1 : i32
    %c0_i32_6 = arith.constant 0 : i32
    %12 = tpu.memref_slice %arg2[%11, %c0_i32_6] : memref<64x300xf32, #tpu.memory_space<any>> -> memref<1x300xf32, #tpu.memory_space<any>>
    %c1_i32_7 = arith.constant 1 : i32
    %c0_i32_8 = arith.constant 0 : i32
    %13 = tpu.memref_slice %arg6[%c1_i32_7, %c0_i32_8] : memref<8x300xf32, #tpu.memory_space<vmem>> -> memref<1x300xf32, #tpu.memory_space<vmem>>
    %14 = tpu.memref_slice %arg7[%c1_i32_5] : memref<8x!tpu.dma_semaphore, #tpu.memory_space<semaphore_mem>> -> memref<1x!tpu.dma_semaphore, #tpu.memory_space<semaphore_mem>>
    %15 = tpu.memref_squeeze %14 : memref<1x!tpu.dma_semaphore, #tpu.memory_space<semaphore_mem>> -> memref<!tpu.dma_semaphore, #tpu.memory_space<semaphore_mem>>
    tpu.enqueue_dma source(%12 : memref<1x300xf32, #tpu.memory_space<any>>) target(%13 : memref<1x300xf32, #tpu.memory_space<vmem>>) target_semaphore(%15 : memref<!tpu.dma_semaphore, #tpu.memory_space<semaphore_mem>>)
    %c8_i32_9 = arith.constant 8 : i32
    %16 = arith.muli %arg0, %c8_i32_9 : i32
    %c2_i32 = arith.constant 2 : i32
    %17 = arith.addi %16, %c2_i32 : i32
    %18 = arith.index_cast %17 : i32 to index
    %19 = memref.load %arg1[%18] : memref<16xi32, #tpu.memory_space<smem>>
    %c2_i32_10 = arith.constant 2 : i32
    %c0_i32_11 = arith.constant 0 : i32
    %20 = tpu.memref_slice %arg2[%19, %c0_i32_11] : memref<64x300xf32, #tpu.memory_space<any>> -> memref<1x300xf32, #tpu.memory_space<any>>
    %c2_i32_12 = arith.constant 2 : i32
    %c0_i32_13 = arith.constant 0 : i32
    %21 = tpu.memref_slice %arg6[%c2_i32_12, %c0_i32_13] : memref<8x300xf32, #tpu.memory_space<vmem>> -> memref<1x300xf32, #tpu.memory_space<vmem>>
    %22 = tpu.memref_slice %arg7[%c2_i32_10] : memref<8x!tpu.dma_semaphore, #tpu.memory_space<semaphore_mem>> -> memref<1x!tpu.dma_semaphore, #tpu.memory_space<semaphore_mem>>
    %23 = tpu.memref_squeeze %22 : memref<1x!tpu.dma_semaphore, #tpu.memory_space<semaphore_mem>> -> memref<!tpu.dma_semaphore, #tpu.memory_space<semaphore_mem>>
    tpu.enqueue_dma source(%20 : memref<1x300xf32, #tpu.memory_space<any>>) target(%21 : memref<1x300xf32, #tpu.memory_space<vmem>>) target_semaphore(%23 : memref<!tpu.dma_semaphore, #tpu.memory_space<semaphore_mem>>)
    %c8_i32_14 = arith.constant 8 : i32
    %24 = arith.muli %arg0, %c8_i32_14 : i32
    %c3_i32 = arith.constant 3 : i32
    %25 = arith.addi %24, %c3_i32 : i32
    %26 = arith.index_cast %25 : i32 to index
    %27 = memref.load %arg1[%26] : memref<16xi32, #tpu.memory_space<smem>>
    %c3_i32_15 = arith.constant 3 : i32
    %c0_i32_16 = arith.constant 0 : i32
    %28 = tpu.memref_slice %arg2[%27, %c0_i32_16] : memref<64x300xf32, #tpu.memory_space<any>> -> memref<1x300xf32, #tpu.memory_space<any>>
    %c3_i32_17 = arith.constant 3 : i32
    %c0_i32_18 = arith.constant 0 : i32
    %29 = tpu.memref_slice %arg6[%c3_i32_17, %c0_i32_18] : memref<8x300xf32, #tpu.memory_space<vmem>> -> memref<1x300xf32, #tpu.memory_space<vmem>>
    %30 = tpu.memref_slice %arg7[%c3_i32_15] : memref<8x!tpu.dma_semaphore, #tpu.memory_space<semaphore_mem>> -> memref<1x!tpu.dma_semaphore, #tpu.memory_space<semaphore_mem>>
    %31 = tpu.memref_squeeze %30 : memref<1x!tpu.dma_semaphore, #tpu.memory_space<semaphore_mem>> -> memref<!tpu.dma_semaphore, #tpu.memory_space<semaphore_mem>>
    tpu.enqueue_dma source(%28 : memref<1x300xf32, #tpu.memory_space<any>>) target(%29 : memref<1x300xf32, #tpu.memory_space<vmem>>) target_semaphore(%31 : memref<!tpu.dma_semaphore, #tpu.memory_space<semaphore_mem>>)
    %c8_i32_19 = arith.constant 8 : i32
    %32 = arith.muli %arg0, %c8_i32_19 : i32
    %c4_i32 = arith.constant 4 : i32
    %33 = arith.addi %32, %c4_i32 : i32
    %34 = arith.index_cast %33 : i32 to index
    %35 = memref.load %arg1[%34] : memref<16xi32, #tpu.memory_space<smem>>
    %c4_i32_20 = arith.constant 4 : i32
    %c0_i32_21 = arith.constant 0 : i32
    %36 = tpu.memref_slice %arg2[%35, %c0_i32_21] : memref<64x300xf32, #tpu.memory_space<any>> -> memref<1x300xf32, #tpu.memory_space<any>>
    %c4_i32_22 = arith.constant 4 : i32
    %c0_i32_23 = arith.constant 0 : i32
    %37 = tpu.memref_slice %arg6[%c4_i32_22, %c0_i32_23] : memref<8x300xf32, #tpu.memory_space<vmem>> -> memref<1x300xf32, #tpu.memory_space<vmem>>
    %38 = tpu.memref_slice %arg7[%c4_i32_20] : memref<8x!tpu.dma_semaphore, #tpu.memory_space<semaphore_mem>> -> memref<1x!tpu.dma_semaphore, #tpu.memory_space<semaphore_mem>>
    %39 = tpu.memref_squeeze %38 : memref<1x!tpu.dma_semaphore, #tpu.memory_space<semaphore_mem>> -> memref<!tpu.dma_semaphore, #tpu.memory_space<semaphore_mem>>
    tpu.enqueue_dma source(%36 : memref<1x300xf32, #tpu.memory_space<any>>) target(%37 : memref<1x300xf32, #tpu.memory_space<vmem>>) target_semaphore(%39 : memref<!tpu.dma_semaphore, #tpu.memory_space<semaphore_mem>>)
    %c8_i32_24 = arith.constant 8 : i32
    %40 = arith.muli %arg0, %c8_i32_24 : i32
    %c5_i32 = arith.constant 5 : i32
    %41 = arith.addi %40, %c5_i32 : i32
    %42 = arith.index_cast %41 : i32 to index
    %43 = memref.load %arg1[%42] : memref<16xi32, #tpu.memory_space<smem>>
    %c5_i32_25 = arith.constant 5 : i32
    %c0_i32_26 = arith.constant 0 : i32
    %44 = tpu.memref_slice %arg2[%43, %c0_i32_26] : memref<64x300xf32, #tpu.memory_space<any>> -> memref<1x300xf32, #tpu.memory_space<any>>
    %c5_i32_27 = arith.constant 5 : i32
    %c0_i32_28 = arith.constant 0 : i32
    %45 = tpu.memref_slice %arg6[%c5_i32_27, %c0_i32_28] : memref<8x300xf32, #tpu.memory_space<vmem>> -> memref<1x300xf32, #tpu.memory_space<vmem>>
    %46 = tpu.memref_slice %arg7[%c5_i32_25] : memref<8x!tpu.dma_semaphore, #tpu.memory_space<semaphore_mem>> -> memref<1x!tpu.dma_semaphore, #tpu.memory_space<semaphore_mem>>
    %47 = tpu.memref_squeeze %46 : memref<1x!tpu.dma_semaphore, #tpu.memory_space<semaphore_mem>> -> memref<!tpu.dma_semaphore, #tpu.memory_space<semaphore_mem>>
    tpu.enqueue_dma source(%44 : memref<1x300xf32, #tpu.memory_space<any>>) target(%45 : memref<1x300xf32, #tpu.memory_space<vmem>>) target_semaphore(%47 : memref<!tpu.dma_semaphore, #tpu.memory_space<semaphore_mem>>)
    %c8_i32_29 = arith.constant 8 : i32
    %48 = arith.muli %arg0, %c8_i32_29 : i32
    %c6_i32 = arith.constant 6 : i32
    %49 = arith.addi %48, %c6_i32 : i32
    %50 = arith.index_cast %49 : i32 to index
    %51 = memref.load %arg1[%50] : memref<16xi32, #tpu.memory_space<smem>>
    %c6_i32_30 = arith.constant 6 : i32
    %c0_i32_31 = arith.constant 0 : i32
    %52 = tpu.memref_slice %arg2[%51, %c0_i32_31] : memref<64x300xf32, #tpu.memory_space<any>> -> memref<1x300xf32, #tpu.memory_space<any>>
    %c6_i32_32 = arith.constant 6 : i32
    %c0_i32_33 = arith.constant 0 : i32
    %53 = tpu.memref_slice %arg6[%c6_i32_32, %c0_i32_33] : memref<8x300xf32, #tpu.memory_space<vmem>> -> memref<1x300xf32, #tpu.memory_space<vmem>>
    %54 = tpu.memref_slice %arg7[%c6_i32_30] : memref<8x!tpu.dma_semaphore, #tpu.memory_space<semaphore_mem>> -> memref<1x!tpu.dma_semaphore, #tpu.memory_space<semaphore_mem>>
    %55 = tpu.memref_squeeze %54 : memref<1x!tpu.dma_semaphore, #tpu.memory_space<semaphore_mem>> -> memref<!tpu.dma_semaphore, #tpu.memory_space<semaphore_mem>>
    tpu.enqueue_dma source(%52 : memref<1x300xf32, #tpu.memory_space<any>>) target(%53 : memref<1x300xf32, #tpu.memory_space<vmem>>) target_semaphore(%55 : memref<!tpu.dma_semaphore, #tpu.memory_space<semaphore_mem>>)
    %c8_i32_34 = arith.constant 8 : i32
    %56 = arith.muli %arg0, %c8_i32_34 : i32
    %c7_i32 = arith.constant 7 : i32
    %57 = arith.addi %56, %c7_i32 : i32
    %58 = arith.index_cast %57 : i32 to index
    %59 = memref.load %arg1[%58] : memref<16xi32, #tpu.memory_space<smem>>
    %c7_i32_35 = arith.constant 7 : i32
    %c0_i32_36 = arith.constant 0 : i32
    %60 = tpu.memref_slice %arg2[%59, %c0_i32_36] : memref<64x300xf32, #tpu.memory_space<any>> -> memref<1x300xf32, #tpu.memory_space<any>>
    %c7_i32_37 = arith.constant 7 : i32
    %c0_i32_38 = arith.constant 0 : i32
    %61 = tpu.memref_slice %arg6[%c7_i32_37, %c0_i32_38] : memref<8x300xf32, #tpu.memory_space<vmem>> -> memref<1x300xf32, #tpu.memory_space<vmem>>
    %62 = tpu.memref_slice %arg7[%c7_i32_35] : memref<8x!tpu.dma_semaphore, #tpu.memory_space<semaphore_mem>> -> memref<1x!tpu.dma_semaphore, #tpu.memory_space<semaphore_mem>>
    %63 = tpu.memref_squeeze %62 : memref<1x!tpu.dma_semaphore, #tpu.memory_space<semaphore_mem>> -> memref<!tpu.dma_semaphore, #tpu.memory_space<semaphore_mem>>
    tpu.enqueue_dma source(%60 : memref<1x300xf32, #tpu.memory_space<any>>) target(%61 : memref<1x300xf32, #tpu.memory_space<vmem>>) target_semaphore(%63 : memref<!tpu.dma_semaphore, #tpu.memory_space<semaphore_mem>>)
    %c0_i32_39 = arith.constant 0 : i32
    %c0_i32_40 = arith.constant 0 : i32
    %64 = tpu.memref_slice %arg2[%3, %c0_i32_40] : memref<64x300xf32, #tpu.memory_space<any>> -> memref<1x300xf32, #tpu.memory_space<any>>
    %c0_i32_41 = arith.constant 0 : i32
    %c0_i32_42 = arith.constant 0 : i32
    %65 = tpu.memref_slice %arg6[%c0_i32_41, %c0_i32_42] : memref<8x300xf32, #tpu.memory_space<vmem>> -> memref<1x300xf32, #tpu.memory_space<vmem>>
    %66 = tpu.memref_slice %arg7[%c0_i32_39] : memref<8x!tpu.dma_semaphore, #tpu.memory_space<semaphore_mem>> -> memref<1x!tpu.dma_semaphore, #tpu.memory_space<semaphore_mem>>
    %67 = tpu.memref_squeeze %66 : memref<1x!tpu.dma_semaphore, #tpu.memory_space<semaphore_mem>> -> memref<!tpu.dma_semaphore, #tpu.memory_space<semaphore_mem>>
    tpu.wait_dma2 semaphore(%67 : memref<!tpu.dma_semaphore, #tpu.memory_space<semaphore_mem>>) src(%64 : memref<1x300xf32, #tpu.memory_space<any>>) dst(%65 : memref<1x300xf32, #tpu.memory_space<vmem>>)
    %c1_i32_43 = arith.constant 1 : i32
    %c0_i32_44 = arith.constant 0 : i32
    %68 = tpu.memref_slice %arg2[%11, %c0_i32_44] : memref<64x300xf32, #tpu.memory_space<any>> -> memref<1x300xf32, #tpu.memory_space<any>>
    %c1_i32_45 = arith.constant 1 : i32
    %c0_i32_46 = arith.constant 0 : i32
    %69 = tpu.memref_slice %arg6[%c1_i32_45, %c0_i32_46] : memref<8x300xf32, #tpu.memory_space<vmem>> -> memref<1x300xf32, #tpu.memory_space<vmem>>
    %70 = tpu.memref_slice %arg7[%c1_i32_43] : memref<8x!tpu.dma_semaphore, #tpu.memory_space<semaphore_mem>> -> memref<1x!tpu.dma_semaphore, #tpu.memory_space<semaphore_mem>>
    %71 = tpu.memref_squeeze %70 : memref<1x!tpu.dma_semaphore, #tpu.memory_space<semaphore_mem>> -> memref<!tpu.dma_semaphore, #tpu.memory_space<semaphore_mem>>
    tpu.wait_dma2 semaphore(%71 : memref<!tpu.dma_semaphore, #tpu.memory_space<semaphore_mem>>) src(%68 : memref<1x300xf32, #tpu.memory_space<any>>) dst(%69 : memref<1x300xf32, #tpu.memory_space<vmem>>)
    %c2_i32_47 = arith.constant 2 : i32
    %c0_i32_48 = arith.constant 0 : i32
    %72 = tpu.memref_slice %arg2[%19, %c0_i32_48] : memref<64x300xf32, #tpu.memory_space<any>> -> memref<1x300xf32, #tpu.memory_space<any>>
    %c2_i32_49 = arith.constant 2 : i32
    %c0_i32_50 = arith.constant 0 : i32
    %73 = tpu.memref_slice %arg6[%c2_i32_49, %c0_i32_50] : memref<8x300xf32, #tpu.memory_space<vmem>> -> memref<1x300xf32, #tpu.memory_space<vmem>>
    %74 = tpu.memref_slice %arg7[%c2_i32_47] : memref<8x!tpu.dma_semaphore, #tpu.memory_space<semaphore_mem>> -> memref<1x!tpu.dma_semaphore, #tpu.memory_space<semaphore_mem>>
    %75 = tpu.memref_squeeze %74 : memref<1x!tpu.dma_semaphore, #tpu.memory_space<semaphore_mem>> -> memref<!tpu.dma_semaphore, #tpu.memory_space<semaphore_mem>>
    tpu.wait_dma2 semaphore(%75 : memref<!tpu.dma_semaphore, #tpu.memory_space<semaphore_mem>>) src(%72 : memref<1x300xf32, #tpu.memory_space<any>>) dst(%73 : memref<1x300xf32, #tpu.memory_space<vmem>>)
    %c3_i32_51 = arith.constant 3 : i32
    %c0_i32_52 = arith.constant 0 : i32
    %76 = tpu.memref_slice %arg2[%27, %c0_i32_52] : memref<64x300xf32, #tpu.memory_space<any>> -> memref<1x300xf32, #tpu.memory_space<any>>
    %c3_i32_53 = arith.constant 3 : i32
    %c0_i32_54 = arith.constant 0 : i32
    %77 = tpu.memref_slice %arg6[%c3_i32_53, %c0_i32_54] : memref<8x300xf32, #tpu.memory_space<vmem>> -> memref<1x300xf32, #tpu.memory_space<vmem>>
    %78 = tpu.memref_slice %arg7[%c3_i32_51] : memref<8x!tpu.dma_semaphore, #tpu.memory_space<semaphore_mem>> -> memref<1x!tpu.dma_semaphore, #tpu.memory_space<semaphore_mem>>
    %79 = tpu.memref_squeeze %78 : memref<1x!tpu.dma_semaphore, #tpu.memory_space<semaphore_mem>> -> memref<!tpu.dma_semaphore, #tpu.memory_space<semaphore_mem>>
    tpu.wait_dma2 semaphore(%79 : memref<!tpu.dma_semaphore, #tpu.memory_space<semaphore_mem>>) src(%76 : memref<1x300xf32, #tpu.memory_space<any>>) dst(%77 : memref<1x300xf32, #tpu.memory_space<vmem>>)
    %c4_i32_55 = arith.constant 4 : i32
    %c0_i32_56 = arith.constant 0 : i32
    %80 = tpu.memref_slice %arg2[%35, %c0_i32_56] : memref<64x300xf32, #tpu.memory_space<any>> -> memref<1x300xf32, #tpu.memory_space<any>>
    %c4_i32_57 = arith.constant 4 : i32
    %c0_i32_58 = arith.constant 0 : i32
    %81 = tpu.memref_slice %arg6[%c4_i32_57, %c0_i32_58] : memref<8x300xf32, #tpu.memory_space<vmem>> -> memref<1x300xf32, #tpu.memory_space<vmem>>
    %82 = tpu.memref_slice %arg7[%c4_i32_55] : memref<8x!tpu.dma_semaphore, #tpu.memory_space<semaphore_mem>> -> memref<1x!tpu.dma_semaphore, #tpu.memory_space<semaphore_mem>>
    %83 = tpu.memref_squeeze %82 : memref<1x!tpu.dma_semaphore, #tpu.memory_space<semaphore_mem>> -> memref<!tpu.dma_semaphore, #tpu.memory_space<semaphore_mem>>
    tpu.wait_dma2 semaphore(%83 : memref<!tpu.dma_semaphore, #tpu.memory_space<semaphore_mem>>) src(%80 : memref<1x300xf32, #tpu.memory_space<any>>) dst(%81 : memref<1x300xf32, #tpu.memory_space<vmem>>)
    %c5_i32_59 = arith.constant 5 : i32
    %c0_i32_60 = arith.constant 0 : i32
    %84 = tpu.memref_slice %arg2[%43, %c0_i32_60] : memref<64x300xf32, #tpu.memory_space<any>> -> memref<1x300xf32, #tpu.memory_space<any>>
    %c5_i32_61 = arith.constant 5 : i32
    %c0_i32_62 = arith.constant 0 : i32
    %85 = tpu.memref_slice %arg6[%c5_i32_61, %c0_i32_62] : memref<8x300xf32, #tpu.memory_space<vmem>> -> memref<1x300xf32, #tpu.memory_space<vmem>>
    %86 = tpu.memref_slice %arg7[%c5_i32_59] : memref<8x!tpu.dma_semaphore, #tpu.memory_space<semaphore_mem>> -> memref<1x!tpu.dma_semaphore, #tpu.memory_space<semaphore_mem>>
    %87 = tpu.memref_squeeze %86 : memref<1x!tpu.dma_semaphore, #tpu.memory_space<semaphore_mem>> -> memref<!tpu.dma_semaphore, #tpu.memory_space<semaphore_mem>>
    tpu.wait_dma2 semaphore(%87 : memref<!tpu.dma_semaphore, #tpu.memory_space<semaphore_mem>>) src(%84 : memref<1x300xf32, #tpu.memory_space<any>>) dst(%85 : memref<1x300xf32, #tpu.memory_space<vmem>>)
    %c6_i32_63 = arith.constant 6 : i32
    %c0_i32_64 = arith.constant 0 : i32
    %88 = tpu.memref_slice %arg2[%51, %c0_i32_64] : memref<64x300xf32, #tpu.memory_space<any>> -> memref<1x300xf32, #tpu.memory_space<any>>
    %c6_i32_65 = arith.constant 6 : i32
    %c0_i32_66 = arith.constant 0 : i32
    %89 = tpu.memref_slice %arg6[%c6_i32_65, %c0_i32_66] : memref<8x300xf32, #tpu.memory_space<vmem>> -> memref<1x300xf32, #tpu.memory_space<vmem>>
    %90 = tpu.memref_slice %arg7[%c6_i32_63] : memref<8x!tpu.dma_semaphore, #tpu.memory_space<semaphore_mem>> -> memref<1x!tpu.dma_semaphore, #tpu.memory_space<semaphore_mem>>
    %91 = tpu.memref_squeeze %90 : memref<1x!tpu.dma_semaphore, #tpu.memory_space<semaphore_mem>> -> memref<!tpu.dma_semaphore, #tpu.memory_space<semaphore_mem>>
    tpu.wait_dma2 semaphore(%91 : memref<!tpu.dma_semaphore, #tpu.memory_space<semaphore_mem>>) src(%88 : memref<1x300xf32, #tpu.memory_space<any>>) dst(%89 : memref<1x300xf32, #tpu.memory_space<vmem>>)
    %c7_i32_67 = arith.constant 7 : i32
    %c0_i32_68 = arith.constant 0 : i32
    %92 = tpu.memref_slice %arg2[%59, %c0_i32_68] : memref<64x300xf32, #tpu.memory_space<any>> -> memref<1x300xf32, #tpu.memory_space<any>>
    %c7_i32_69 = arith.constant 7 : i32
    %c0_i32_70 = arith.constant 0 : i32
    %93 = tpu.memref_slice %arg6[%c7_i32_69, %c0_i32_70] : memref<8x300xf32, #tpu.memory_space<vmem>> -> memref<1x300xf32, #tpu.memory_space<vmem>>
    %94 = tpu.memref_slice %arg7[%c7_i32_67] : memref<8x!tpu.dma_semaphore, #tpu.memory_space<semaphore_mem>> -> memref<1x!tpu.dma_semaphore, #tpu.memory_space<semaphore_mem>>
    %95 = tpu.memref_squeeze %94 : memref<1x!tpu.dma_semaphore, #tpu.memory_space<semaphore_mem>> -> memref<!tpu.dma_semaphore, #tpu.memory_space<semaphore_mem>>
    tpu.wait_dma2 semaphore(%95 : memref<!tpu.dma_semaphore, #tpu.memory_space<semaphore_mem>>) src(%92 : memref<1x300xf32, #tpu.memory_space<any>>) dst(%93 : memref<1x300xf32, #tpu.memory_space<vmem>>)
    %c0 = arith.constant 0 : index
    %c0_71 = arith.constant 0 : index
    %96 = vector.load %arg6[%c0, %c0_71] : memref<8x300xf32, #tpu.memory_space<vmem>>, vector<8x300xf32>
    %c0_72 = arith.constant 0 : index
    %c0_73 = arith.constant 0 : index
    %97 = vector.load %arg3[%c0_72, %c0_73] : memref<300x128xf32, #tpu.memory_space<vmem>>, vector<300x128xf32>
    %cst = arith.constant dense<0.000000e+00> : vector<8x128xf32>
    %98 = tpu.matmul %96, %97, %cst {dimension_numbers = #tpu.dot_dimension_numbers<[1], [0], [0], [1], [0, 0, 1, 1], [], []>} : vector<8x300xf32>, vector<300x128xf32>, vector<8x128xf32> -> vector<8x128xf32>
    %c0_74 = arith.constant 0 : index
    %c0_75 = arith.constant 0 : index
    %99 = vector.load %arg4[%c0_74, %c0_75] : memref<1x128xf32, #tpu.memory_space<vmem>>, vector<1x128xf32>
    %100 = vector.broadcast %99 : vector<1x128xf32> to vector<8x128xf32>
    %101 = arith.addf %98, %100 : vector<8x128xf32>
    %c0_76 = arith.constant 0 : index
    %c0_77 = arith.constant 0 : index
    %102 = vector.load %arg5[%c0_76, %c0_77] : memref<8x128xf32, #tpu.memory_space<vmem>>, vector<8x128xf32>
    tpu.vector_store %arg5[%c0_76, %c0_77], %101 {strides = array<i32>} : memref<8x128xf32, #tpu.memory_space<vmem>>, vector<8x128xf32>,
    return
  }
  func.func @transform_1(%arg0: i32, %arg1: memref<16xi32, #tpu.memory_space<smem>>) -> (i32, i32) {
    %c0_i32 = arith.constant 0 : i32
    %c0_i32_0 = arith.constant 0 : i32
    %c0_i32_1 = arith.constant 0 : i32
    return %c0_i32, %c0_i32_0 : i32, i32
  }
  func.func @transform_2(%arg0: i32, %arg1: memref<16xi32, #tpu.memory_space<smem>>) -> (i32, i32) {
    %c0_i32 = arith.constant 0 : i32
    %c0_i32_0 = arith.constant 0 : i32
    %c0_i32_1 = arith.constant 0 : i32
    return %c0_i32, %c0_i32_0 : i32, i32
  }
  func.func @transform_3(%arg0: i32, %arg1: memref<16xi32, #tpu.memory_space<smem>>) -> (i32, i32) {
    %c0_i32 = arith.constant 0 : i32
    %c0_i32_0 = arith.constant 0 : i32
    return %arg0, %c0_i32 : i32, i32
  }
}

</mosaic_0001>

<bundles_post_ra>
// kernel: tpu_custom_call.1
= control target key start
LH: loop header
LB: loop body
LE: loop exit
PB: predicated region body
PF: predicated region fallthrough
CT: control target
= control target key end

     0   :  { %s1519_s0 = inlined_call_operand.hbm [shape: s32[16], index: 0, kind: input, shape index: {}]   ;;  %s1520_s1 = inlined_call_operand.hbm [shape: f32[64,300], index: 1, kind: input, shape index: {}]   ;;  %s1521_s2 = inlined_call_operand.hbm [shape: f32[300,128], index: 2, kind: input, shape index: {}]   ;;  %s1522_s3 = inlined_call_operand.vmem [shape: f32[1,128], index: 3, kind: input, shape index: {}]   ;;  %s1523_s4 = inlined_call_operand.hbm [shape: f32[16,128], index: 4, kind: output, shape index: {}]  }
   0x1   :  { %1538 = sst [smem:[#allocation37_spill]] %s1521_s2  ;;  %s831_s17 = scalar_lea.hbm %s1519_s0, 16 }
   0x2   :  { %1539 = sst [smem:[#allocation38_spill]] %s1522_s3  ;;  %p832_p0 = scmp.ne.s32.totalorder %s1519_s0, %s831_s17 }
   0x3   :  { %1540 = sst [smem:[#allocation39_spill]] %s1523_s4  ;;  %p835_p1 = scmp.lt.u32.totalorder %s831_s17, %s1519_s0 }
   0x5   :  { %p837_p2 = pnand %p835_p1, %p832_p0 }
   0x7   :  { %840 = shalt.err (!%p837_p2)  }
   0x8   :  { %s1147_s22 = smov [#allocation5]  }
   0x9   :  { %10 = dma.hbm_to_smem %s1519_s0, 16, %s1147_s22, [#allocation4] }
   0xa   :  { %1105 = dma.done.wait [#allocation4], 16 }
   0xb   :  { %1106 = vsyncadd [#allocation4], 4294967280 }
   0xc   :  { %12 = sfence }
   0xd   :  { %13 = vsyncpa [#allocation7], 0 }
   0xe   :  { %14 = vsyncpa [#allocation8], 0 }
   0xf   :  { %16 = vsyncpa [#allocation8 + $0x1], 0  ;;  %s1203_s25 = smov 0   ;;  %s1205_s26 = smov 0  }
  0x10   :  { %s1207_s27 = smov 0   ;;  %s1209_s28 = smov 0  }
  0x11 LB: > { %1541 = sst [smem:[#allocation29_spill]] %s1133_s25  ;;  %s1224_s0 = sadd.s32 4294967295, %s1145_s28   ;;  %s1145_s28 = sphi %s1209_s28, %s1567_s28   ;;  %s1141_s27 = sphi %s1207_s27, %s1570_s27   ;;  %s1137_s26 = sphi %s1205_s26, %s1569_s26   ;;  %s1133_s25 = sphi %s1203_s25, %s1568_s25  }
  0x12   : > { %1542 = sst [smem:[#allocation30_spill]] %s1137_s26  ;;  %s635_s29 = sadd.s32 4294967294, %s1145_s28  }
  0x13   : > { %1543 = sst [smem:[#allocation31_spill]] %s1141_s27  ;;  %s1228_s30 = sadd.s32 1, %s1145_s28  }
  0x14   : > { %1544 = sst [smem:[#allocation32_spill]] %s1145_s28  ;;  %s71_s5 = sadd.s32 1, %s1141_s27 }
  0x15   : > { %1545 = sst [smem:[#allocation33_spill]] %s1228_s30  ;;  %s68_s6 = ssub.s32 %s1145_s28, %s1228_s30 }
  0x16   : > { %p81_p3 = scmp.ne.s32.totalorder %s1141_s27, %s1137_s26  ;;  %p69_p4 = scmp.eq.s32.totalorder %s68_s6, 0 }
  0x17   : > { %p82_p5 = scmp.eq.s32.totalorder %s1224_s0, 1  ;;  %p87_p6 = scmp.ne.s32.totalorder %s1137_s26, %s1133_s25 }
  0x18   : > { %p88_p7 = scmp.eq.s32.totalorder %s635_s29, 1  ;;  %p636_p10 = scmp.ge.s32.totalorder %s1145_s28, 1 }
  0x19   : > { %s1239_s7 = scalar_select %p69_p4, %s1141_s27, %s71_s5  }
  0x1a   : > { %p1241_p8 = por %p82_p5, %p81_p3  ;;  %p1245_p9 = por %p88_p7, %p87_p6 }
  0x1b   : > { %1546 = sst [smem:[#allocation34_spill]] %s1239_s7  ;;  %p95_p11 = scmp.lt.s32.totalorder %s1145_s28, 3 }
  0x1c   : > { %s1547_s8 = scalar_select %p1241_p8, 1, 0 }
  0x1d   : > { %s1549_s9 = scalar_select %p1245_p9, 1, 0 }
  0x1e   : > { %1548 = sst [smem:[#allocation35_spill]] %s1547_s8  ;;  %p1524_p12 = scmp.eq.s32.totalorder %s1224_s0, 0 }
  0x1f   : > { %1550 = sst [smem:[#allocation36_spill]] %s1549_s9  ;;  %p1252_p13 = pnand %p636_p10, %p95_p11 }
  0x20   : > { %s1148_s11 = smov [#allocation6]   ;;  %s1553_s2 = sld [smem:[#allocation37_spill]] }
  0x21   : > { %s1551_s10 = scalar_select %p1252_p13, 1, 0 }
  0x22   : > { %s107_s12 = sshll.u32 %s1148_s11, 4  ;;  %p770_p0 = pneg %p1252_p13  ;;  %s108_s12 = int_to_ptr.vmem [resolvable:$true] %s107_s12 }
  0x24   : > { %p1260_p1 = pnand %p1524_p12, %p770_p0 }
  0x26   : > { %s841_s16 = scalar_lea.hbm %s1553_s2, 4864  ;;  %p843_p3 = pneg %p1260_p1 }
  0x27   : > { %p842_p2 = scmp.ne.s32.totalorder %s1553_s2, %s841_s16  ;;  %p848_p6 = scmp.lt.u32.totalorder %s841_s16, %s1553_s2 }
  0x29   : > { %p844_p4 = pnand %p843_p3, %p842_p2 }
  0x2b   : > { %p845_p5 = pneg %p844_p4 }
  0x2d   : > { %p850_p7 = pnand %p848_p6, %p845_p5 }
  0x2f   : > { %853 = shalt.err (!%p850_p7)
}
  0x30   : > { %s854_s21 = scalar_lea.vmem %s108_s12, 4864  ;;  %p862_p12 = scmp.lt.s32.totalorder %s108_s12, %s108_s12 }
  0x31   : > { %p855_p10 = scmp.ne.s32.totalorder %s108_s12, %s854_s21  ;;  %p863_p9 = scmp.lt.s32.totalorder %s854_s21, %s854_s21 }
  0x33   : > { %p857_p11 = pnand %p855_p10, %p843_p3  ;;  %p864_p8 = por %p863_p9, %p862_p12 }
  0x35   : > { %p858_p0 = pneg %p857_p11 }
  0x37   : > { %p865_p13 = pnand %p864_p8, %p858_p0 }
  0x39   : > { %868 = shalt.err (!%p865_p13)
}
  0x3a   : > { %s1149_s22 = smov 128   ;;  %s1150_s23 = smov 8  }
  0x3b   : > { %773 = dma.hbm_to_vmem [thread:$0]  (!%p1260_p1), %s1553_s2, 4864, %s108_s12, [#allocation7], %s1149_s22, %s1149_s22, %s1150_s23  }
  0x3c   : > { %p1554_p2 = scmp.ne.s32.totalorder %s1551_s10, 0 }
  0x3d   : > { %p1555_p4 = scmp.eq.s32.totalorder (!%p1554_p2), %s1224_s0, 0 }
  0x3e   : > { %126 = sbr.rel (%p1554_p2) target bundleno = 561 (0x231), region = 28 }
  0x45   : > { %1108 = dma.done.wait (%p1555_p4), [#allocation7], 4864   ;;  %p1556_p3 = pmov %p1555_p4 }
  0x46   : > { %s1527_s5 = sand.u32 1, %s1137_s26   ;;  %s1288_s6 = sshll.u32 %s1224_s0, 3 }
  0x47   : > { %1110 = vsyncadd (%p1556_p3), [#allocation7], 4294962432  ;;  %s1292_s11 = sshll.u32 %s1527_s5, 3  ;;  %s144_s10 = sld [smem:[#allocation5 + %s1288_s6]] }
  0x48   : > { %s1151_s12 = smov [#allocation2]   ;;  %s156_s14 = sadd.s32 1, %s1288_s6 }
  0x49   : > { %s152_s13 = sshll.u32 %s1151_s12, 4  ;;  %s1298_s15 = sld [smem:[#allocation5 + %s156_s14]]  ;;  %s1295_s13 = int_to_ptr.vmem [resolvable:$true] %s152_s13 }
  0x4a   : > { %s1152_s16 = smov [#allocation2 + $0x1]   ;;  %s171_s21 = sadd.s32 2, %s1288_s6 }
  0x4b   : > { %s167_s17 = sshll.u32 %s1152_s16, 4  ;;  %s1303_s23 = sld [smem:[#allocation5 + %s171_s21]]  ;;  %s1300_s17 = int_to_ptr.vmem [resolvable:$true] %s167_s17 }
  0x4c   : > { %s1153_s29 = smov [#allocation2 + $0x2]  }
  0x4d   : > { %s145_s18 = sshrl.u32 %s144_s10, 3  ;;  %s146_s19 = sand.u32 7, %s144_s10  }
  0x4e   : > { %s147_s20 = smul.u32 24, %s145_s18  ;;  %s182_s12 = sshll.u32 %s1153_s29, 4  ;;  %s1331_s12 = int_to_ptr.vmem [resolvable:$true] %s182_s12 }
  0x4f   : > { %s158_s7 = sshrl.u32 %s1298_s15, 3  ;;  %s1312_s10 = scalar_lea.hbm %s1520_s1, 3072 }
  0x50   : > { %s148_s22 = sadd.s32 %s147_s20, %s146_s19 }
  0x51   : > { %s642_s24 = sshll.u32 %s148_s22, 4 }
  0x52   : > { %s150_s14 = scalar_lea.hbm %s1520_s1, %s642_s24 }
  0x53   : > { %s869_s27 = scalar_lea.hbm %s150_s14, 48  ;;  %p872_p9 = scmp.lt.u32.totalorder %s150_s14, %s1520_s1 }
  0x54   : > { %p870_p8 = scmp.ne.s32.totalorder %s150_s14, %s869_s27  ;;  %p873_p12 = scmp.lt.u32.totalorder %s1312_s10, %s869_s27 }
  0x55   : > { %p875_p1 = scmp.lt.u32.totalorder %s869_s27, %s150_s14 }
  0x56   : > { %p874_p13 = por %p873_p12, %p872_p9 }
  0x58   : > { %p876_p5 = por %p875_p1, %p874_p13 }
  0x5a   : > { %p877_p6 = pnand %p876_p5, %p870_p8 }
  0x5c   : > { %880 = shalt.err (!%p877_p6)  }
  0x5d   : > { %s881_s2 = scalar_lea.vmem %s1295_s13, 48  ;;  %s1321_s30 = scalar_lea.vmem %s1295_s13, 384 }
  0x5e   : > { %p882_p7 = scmp.ne.s32.totalorder %s1295_s13, %s881_s2  ;;  %p886_p10 = scmp.lt.s32.totalorder %s1295_s13, %s1295_s13 }
  0x5f   : > { %p887_p11 = scmp.lt.s32.totalorder %s1321_s30, %s881_s2 }
  0x61   : > { %p888_p0 = por %p887_p11, %p886_p10 }
  0x63   : > { %p889_p2 = pnand %p888_p0, %p882_p7 }
  0x65   : > { %892 = shalt.err (!%p889_p2)  }
  0x66   : > { %s1154_s9 = smov 128   ;;  %s1155_s27 = smov 1  }
  0x67   : > { %155 = dma.hbm_to_vmem [thread:$0]  %s150_s14, 48, %s1295_s13, [#allocation3], %s1154_s9, %s1154_s9, %s1155_s27 }
  0x68   : > { %s159_s5 = sand.u32 7, %s1298_s15   ;;  %s160_s19 = smul.u32 24, %s158_s7 }
  0x69   : > { %s186_s20 = sadd.s32 3, %s1288_s6  ;;  %s173_s22 = sshrl.u32 %s1303_s23, 3 }
  0x6a   : > { %s161_s21 = sadd.s32 %s160_s19, %s159_s5  ;;  %s174_s29 = sand.u32 7, %s1303_s23  }
  0x6b   : > { %s643_s24 = sshll.u32 %s161_s21, 4  ;;  %s175_s25 = smul.u32 24, %s173_s22 }
  0x6c   : > { %s163_s2 = scalar_lea.hbm %s1520_s1, %s643_s24 }
  0x6d   : > { %s893_s28 = scalar_lea.hbm %s163_s2, 48  ;;  %p896_p3 = scmp.lt.u32.totalorder %s163_s2, %s1520_s1 }
  0x6e   : > { %p894_p4 = scmp.ne.s32.totalorder %s163_s2, %s893_s28  ;;  %p897_p8 = scmp.lt.u32.totalorder %s1312_s10, %s893_s28 }
  0x6f   : > { %p899_p12 = scmp.lt.u32.totalorder %s893_s28, %s163_s2 }
  0x70   : > { %p898_p9 = por %p897_p8, %p896_p3 }
  0x72   : > { %p900_p13 = por %p899_p12, %p898_p9 }
  0x74   : > { %p901_p1 = pnand %p900_p13, %p894_p4 }
  0x76   : > { %904 = shalt.err (!%p901_p1)  }
  0x77   : > { %s905_s7 = scalar_lea.vmem %s1300_s17, 48  ;;  %p910_p6 = scmp.lt.s32.totalorder %s1300_s17, %s1295_s13 }
  0x78   : > { %p906_p5 = scmp.ne.s32.totalorder %s1300_s17, %s905_s7  ;;  %p911_p7 = scmp.lt.s32.totalorder %s1321_s30, %s905_s7 }
  0x7a   : > { %p912_p10 = por %p911_p7, %p910_p6 }
  0x7c   : > { %p913_p11 = pnand %p912_p10, %p906_p5 }
  0x7e   : > { %916 = shalt.err (!%p913_p11)  }
  0x7f   : > { %170 = dma.hbm_to_vmem [thread:$0]  %s163_s2, 48, %s1300_s17, [#allocation3 + $0x1], %s1154_s9, %s1154_s9, %s1155_s27 }
  0x80   : > { %s176_s3 = sadd.s32 %s175_s25, %s174_s29  ;;  %s1352_s4 = sld [smem:[#allocation5 + %s186_s20]] }
  0x81   : > { %s644_s28 = sshll.u32 %s176_s3, 4  ;;  %s1156_s5 = smov [#allocation2 + $0x3]  }
  0x82   : > { %s178_s14 = scalar_lea.hbm %s1520_s1, %s644_s28  ;;  %s197_s19 = sshll.u32 %s1156_s5, 4  ;;  %s1370_s19 = int_to_ptr.vmem [resolvable:$true] %s197_s19 }
  0x83   : > { %s917_s21 = scalar_lea.hbm %s178_s14, 48  ;;  %p920_p2 = scmp.lt.u32.totalorder %s178_s14, %s1520_s1 }
  0x84   : > { %p918_p0 = scmp.ne.s32.totalorder %s178_s14, %s917_s21  ;;  %p921_p4 = scmp.lt.u32.totalorder %s1312_s10, %s917_s21 }
  0x85   : > { %p923_p8 = scmp.lt.u32.totalorder %s917_s21, %s178_s14 }
  0x86   : > { %p922_p3 = por %p921_p4, %p920_p2 }
  0x88   : > { %p924_p9 = por %p923_p8, %p922_p3 }
  0x8a   : > { %p925_p12 = pnand %p924_p9, %p918_p0 }
  0x8c   : > { %928 = shalt.err (!%p925_p12)  }
  0x8d   : > { %s929_s25 = scalar_lea.vmem %s1331_s12, 48  ;;  %p934_p1 = scmp.lt.s32.totalorder %s1331_s12, %s1295_s13 }
  0x8e   : > { %p930_p13 = scmp.ne.s32.totalorder %s1331_s12, %s929_s25  ;;  %p935_p5 = scmp.lt.s32.totalorder %s1321_s30, %s929_s25 }
  0x90   : > { %p936_p6 = por %p935_p5, %p934_p1 }
  0x92   : > { %p937_p7 = pnand %p936_p6, %p930_p13 }
  0x94   : > { %940 = shalt.err (!%p937_p7)  }
  0x95   : > { %185 = dma.hbm_to_vmem [thread:$0]  %s178_s14, 48, %s1331_s12, [#allocation3 + $0x2], %s1154_s9, %s1154_s9, %s1155_s27 }
  0x96   : > { %s201_s17 = sadd.s32 4, %s1288_s6  ;;  %s188_s29 = sshrl.u32 %s1352_s4, 3 }
  0x97   : > { %s1373_s20 = sld [smem:[#allocation5 + %s201_s17]]  ;;  %s189_s16 = sand.u32 7, %s1352_s4  }
  0x98   : > { %s190_s18 = smul.u32 24, %s188_s29  ;;  %s1157_s2 = smov [#allocation2 + $0x4]  }
  0x99   : > { %s212_s7 = sshll.u32 %s1157_s2, 4  ;;  %s216_s3 = sadd.s32 5, %s1288_s6  ;;  %s1377_s7 = int_to_ptr.vmem [resolvable:$true] %s212_s7 }
  0x9a   : > { %s191_s28 = sadd.s32 %s190_s18, %s189_s16  ;;  %s1380_s15 = sld [smem:[#allocation5 + %s216_s3]] }
  0x9b   : > { %s645_s23 = sshll.u32 %s191_s28, 4 }
  0x9c   : > { %s193_s5 = scalar_lea.hbm %s1520_s1, %s645_s23 }
  0x9d   : > { %s203_s21 = sshrl.u32 %s1373_s20, 3  ;;  %s941_s22 = scalar_lea.hbm %s193_s5, 48 }
  0x9e   : > { %p942_p10 = scmp.ne.s32.totalorder %s193_s5, %s941_s22  ;;  %p944_p11 = scmp.lt.u32.totalorder %s193_s5, %s1520_s1 }
  0x9f   : > { %p945_p0 = scmp.lt.u32.totalorder %s1312_s10, %s941_s22  ;;  %p947_p4 = scmp.lt.u32.totalorder %s941_s22, %s193_s5 }
  0xa1   : > { %p946_p2 = por %p945_p0, %p944_p11 }
  0xa3   : > { %p948_p3 = por %p947_p4, %p946_p2 }
  0xa5   : > { %p949_p8 = pnand %p948_p3, %p942_p10 }
  0xa7   : > { %952 = shalt.err (!%p949_p8)  }
  0xa8   : > { %s953_s4 = scalar_lea.vmem %s1370_s19, 48  ;;  %p958_p12 = scmp.lt.s32.totalorder %s1370_s19, %s1295_s13 }
  0xa9   : > { %p954_p9 = scmp.ne.s32.totalorder %s1370_s19, %s953_s4  ;;  %p959_p13 = scmp.lt.s32.totalorder %s1321_s30, %s953_s4 }
  0xab   : > { %p960_p1 = por %p959_p13, %p958_p12 }
  0xad   : > { %p961_p5 = pnand %p960_p1, %p954_p9 }
  0xaf   : > { %964 = shalt.err (!%p961_p5)  }
  0xb0   : > { %200 = dma.hbm_to_vmem [thread:$0]  %s193_s5, 48, %s1370_s19, [#allocation3 + $0x3], %s1154_s9, %s1154_s9, %s1155_s27 }
  0xb1   : > { %s204_s17 = sand.u32 7, %s1373_s20   ;;  %s205_s29 = smul.u32 24, %s203_s21 }
  0xb2   : > { %s1158_s16 = smov [#allocation2 + $0x5]   ;;  %s231_s2 = sadd.s32 6, %s1288_s6 }
  0xb3   : > { %s227_s18 = sshll.u32 %s1158_s16, 4  ;;  %s206_s3 = sadd.s32 %s205_s29, %s204_s17  ;;  %s228_s18 = int_to_ptr.vmem [resolvable:$true] %s227_s18 }
  0xb4   : > { %s218_s28 = sshrl.u32 %s1380_s15, 3  ;;  %s646_s23 = sshll.u32 %s206_s3, 4 }
  0xb5   : > { %s219_s12 = sand.u32 7, %s1380_s15   ;;  %s208_s24 = scalar_lea.hbm %s1520_s1, %s646_s23 }
  0xb6   : > { %s220_s25 = smul.u32 24, %s218_s28  ;;  %s965_s4 = scalar_lea.hbm %s208_s24, 48 }
  0xb7   : > { %p966_p6 = scmp.ne.s32.totalorder %s208_s24, %s965_s4  ;;  %p968_p7 = scmp.lt.u32.totalorder %s208_s24, %s1520_s1 }
  0xb8   : > { %p969_p10 = scmp.lt.u32.totalorder %s1312_s10, %s965_s4  ;;  %p971_p0 = scmp.lt.u32.totalorder %s965_s4, %s208_s24 }
  0xba   : > { %p970_p11 = por %p969_p10, %p968_p7 }
  0xbc   : > { %p972_p2 = por %p971_p0, %p970_p11 }
  0xbe   : > { %p973_p4 = pnand %p972_p2, %p966_p6 }
  0xc0   : > { %976 = shalt.err (!%p973_p4)  }
  0xc1   : > { %s977_s19 = scalar_lea.vmem %s1377_s7, 48  ;;  %p982_p8 = scmp.lt.s32.totalorder %s1377_s7, %s1295_s13 }
  0xc2   : > { %p978_p3 = scmp.ne.s32.totalorder %s1377_s7, %s977_s19  ;;  %p983_p9 = scmp.lt.s32.totalorder %s1321_s30, %s977_s19 }
  0xc4   : > { %p984_p12 = por %p983_p9, %p982_p8 }
  0xc6   : > { %p985_p13 = pnand %p984_p12, %p978_p3 }
  0xc8   : > { %988 = shalt.err (!%p985_p13)  }
  0xc9   : > { %215 = dma.hbm_to_vmem [thread:$0]  %s208_s24, 48, %s1377_s7, [#allocation3 + $0x4], %s1154_s9, %s1154_s9, %s1155_s27 }
  0xca   : > { %s221_s26 = sadd.s32 %s220_s25, %s219_s12  ;;  %s232_s20 = sld [smem:[#allocation5 + %s231_s2]] }
  0xcb   : > { %s647_s8 = sshll.u32 %s221_s26, 4 }
  0xcc   : > { %s223_s21 = scalar_lea.hbm %s1520_s1, %s647_s8 }
  0xcd   : > { %s989_s17 = scalar_lea.hbm %s223_s21, 48  ;;  %p992_p5 = scmp.lt.u32.totalorder %s223_s21, %s1520_s1 }
  0xce   : > { %p990_p1 = scmp.ne.s32.totalorder %s223_s21, %s989_s17  ;;  %p993_p6 = scmp.lt.u32.totalorder %s1312_s10, %s989_s17 }
  0xcf   : > { %p995_p10 = scmp.lt.u32.totalorder %s989_s17, %s223_s21 }
  0xd0   : > { %p994_p7 = por %p993_p6, %p992_p5 }
  0xd2   : > { %p996_p11 = por %p995_p10, %p994_p7 }
  0xd4   : > { %p997_p0 = pnand %p996_p11, %p990_p1 }
  0xd6   : > { %1000 = shalt.err (!%p997_p0)  }
  0xd7   : > { %s1001_s7 = scalar_lea.vmem %s228_s18, 48  ;;  %p1006_p4 = scmp.lt.s32.totalorder %s228_s18, %s1295_s13 }
  0xd8   : > { %p1002_p2 = scmp.ne.s32.totalorder %s228_s18, %s1001_s7  ;;  %p1007_p3 = scmp.lt.s32.totalorder %s1321_s30, %s1001_s7 }
  0xda   : > { %p1008_p8 = por %p1007_p3, %p1006_p4 }
  0xdc   : > { %p1009_p9 = pnand %p1008_p8, %p1002_p2 }
  0xde   : > { %1012 = shalt.err (!%p1009_p9)  }
  0xdf   : > { %230 = dma.hbm_to_vmem [thread:$0]  %s223_s21, 48, %s228_s18, [#allocation3 + $0x5], %s1154_s9, %s1154_s9, %s1155_s27 }
  0xe0   : > { %s246_s2 = sadd.s32 7, %s1288_s6  ;;  %s1159_s28 = smov [#allocation2 + $0x6]  }
  0xe1   : > { %s1432_s3 = sld [smem:[#allocation5 + %s246_s2]]  ;;  %s242_s23 = sshll.u32 %s1159_s28, 4  ;;  %s243_s23 = int_to_ptr.vmem [resolvable:$true] %s242_s23 }
  0xe2   : > { %s233_s12 = sshrl.u32 %s232_s20, 3  ;;  %s234_s14 = sand.u32 7, %s232_s20  }
  0xe3   : > { %s235_s22 = smul.u32 24, %s233_s12  ;;  %s1160_s25 = smov [#allocation2 + $0x7]  }
  0xe4   : > { %s257_s4 = sshll.u32 %s1160_s25, 4  ;;  %s258_s4 = int_to_ptr.vmem [resolvable:$true] %s257_s4 }
  0xe5   : > { %s236_s24 = sadd.s32 %s235_s22, %s234_s14 }
  0xe6   : > { %s648_s19 = sshll.u32 %s236_s24, 4 }
  0xe7   : > { %s248_s26 = sshrl.u32 %s1432_s3, 3  ;;  %s238_s6 = scalar_lea.hbm %s1520_s1, %s648_s19 }
  0xe8   : > { %s249_s18 = sand.u32 7, %s1432_s3   ;;  %s1013_s5 = scalar_lea.hbm %s238_s6, 48 }
  0xe9   : > { %p1014_p12 = scmp.ne.s32.totalorder %s238_s6, %s1013_s5  ;;  %p1016_p13 = scmp.lt.u32.totalorder %s238_s6, %s1520_s1 }
  0xea   : > { %p1017_p1 = scmp.lt.u32.totalorder %s1312_s10, %s1013_s5  ;;  %p1019_p6 = scmp.lt.u32.totalorder %s1013_s5, %s238_s6 }
  0xec   : > { %p1018_p5 = por %p1017_p1, %p1016_p13 }
  0xee   : > { %p1020_p7 = por %p1019_p6, %p1018_p5 }
  0xf0   : > { %p1021_p10 = pnand %p1020_p7, %p1014_p12 }
  0xf2   : > { %1024 = shalt.err (!%p1021_p10)  }
  0xf3   : > { %s1025_s20 = scalar_lea.vmem %s243_s23, 48  ;;  %p1030_p0 = scmp.lt.s32.totalorder %s243_s23, %s1295_s13 }
  0xf4   : > { %p1026_p11 = scmp.ne.s32.totalorder %s243_s23, %s1025_s20  ;;  %p1031_p2 = scmp.lt.s32.totalorder %s1321_s30, %s1025_s20 }
  0xf6   : > { %p1032_p4 = por %p1031_p2, %p1030_p0 }
  0xf8   : > { %p1033_p3 = pnand %p1032_p4, %p1026_p11 }
  0xfa   : > { %1036 = shalt.err (!%p1033_p3)  }
  0xfb   : > { %245 = dma.hbm_to_vmem [thread:$0]  %s238_s6, 48, %s243_s23, [#allocation3 + $0x6], %s1154_s9, %s1154_s9, %s1155_s27 }
  0xfc   : > { %s250_s29 = smul.u32 24, %s248_s26 }
  0xfe   : > { %s251_s16 = sadd.s32 %s250_s29, %s249_s18 }
  0xff   : > { %s649_s7 = sshll.u32 %s251_s16, 4 }
 0x100   : > { %s253_s28 = scalar_lea.hbm %s1520_s1, %s649_s7 }
 0x101   : > { %s1037_s12 = scalar_lea.hbm %s253_s28, 48  ;;  %p1040_p9 = scmp.lt.u32.totalorder %s253_s28, %s1520_s1 }
 0x102   : > { %p1038_p8 = scmp.ne.s32.totalorder %s253_s28, %s1037_s12  ;;  %p1041_p12 = scmp.lt.u32.totalorder %s1312_s10, %s1037_s12 }
 0x103   : > { %p1043_p1 = scmp.lt.u32.totalorder %s1037_s12, %s253_s28 }
 0x104   : > { %p1042_p13 = por %p1041_p12, %p1040_p9 }
 0x106   : > { %p1044_p5 = por %p1043_p1, %p1042_p13 }
 0x108   : > { %p1045_p6 = pnand %p1044_p5, %p1038_p8 }
 0x10a   : > { %1048 = shalt.err (!%p1045_p6)  }
 0x10b   : > { %s1049_s23 = scalar_lea.vmem %s258_s4, 48  ;;  %p1054_p10 = scmp.lt.s32.totalorder %s258_s4, %s1295_s13 }
 0x10c   : > { %p1050_p7 = scmp.ne.s32.totalorder %s258_s4, %s1049_s23  ;;  %p1055_p11 = scmp.lt.s32.totalorder %s1321_s30, %s1049_s23 }
 0x10e   : > { %p1056_p0 = por %p1055_p11, %p1054_p10 }
 0x110   : > { %p1057_p2 = pnand %p1056_p0, %p1050_p7 }
 0x112   : > { %1060 = shalt.err (!%p1057_p2)  }
 0x113   : > { %260 = dma.hbm_to_vmem [thread:$0]  %s253_s28, 48, %s258_s4, [#allocation3 + $0x7], %s1154_s9, %s1154_s9, %s1155_s27 }
 0x114   : > { %s142_s10 = scalar_lea.vmem [#allocation9], %s1292_s11 }
 0x115   : > { %1111 = dma.done.wait [#allocation3], 48 }
 0x116   : > { %1112 = vsyncadd [#allocation3], 4294967248 }
 0x117   : > { %1113 = dma.done.wait [#allocation3 + $0x1], 48 }
 0x118   : > { %1114 = vsyncadd [#allocation3 + $0x1], 4294967248 }
 0x119   : > { %1115 = dma.done.wait [#allocation3 + $0x2], 48 }
 0x11a   : > { %1116 = vsyncadd [#allocation3 + $0x2], 4294967248 }
 0x11b   : > { %1117 = dma.done.wait [#allocation3 + $0x3], 48 }
 0x11c   : > { %1118 = vsyncadd [#allocation3 + $0x3], 4294967248 }
 0x11d   : > { %1119 = dma.done.wait [#allocation3 + $0x4], 48 }
 0x11e   : > { %1120 = vsyncadd [#allocation3 + $0x4], 4294967248 }
 0x11f   : > { %1121 = dma.done.wait [#allocation3 + $0x5], 48 }
 0x120   : > { %1122 = vsyncadd [#allocation3 + $0x5], 4294967248 }
 0x121   : > { %1123 = dma.done.wait [#allocation3 + $0x6], 48 }
 0x122   : > { %1124 = vsyncadd [#allocation3 + $0x6], 4294967248 }
 0x123   : > { %1125 = dma.done.wait [#allocation3 + $0x7], 48 }
 0x124   : > { %1126 = vsyncadd [#allocation3 + $0x7], 4294967248  ;;  %v1161_v0 = vmov 0.0|0.0   ;;  %vm1162_vm0 = vmmov 0   ;;  %v1163_v1 = vmov 0.0   ;;  %v297_v2 = vld [vmem:[#allocation6 + $0x80] sm:$0xff] }
 0x125   : > { %754 = vmatprep.subr.bf16.mxu1 %v1161_v0  ;;  %719 = vmatprep.mubr.msk.f32.mxu1 %vm1162_vm0, %v1163_v1  ;;  %v298_v3 = vld [vmem:[#allocation6 + $0x88] sm:$0xff]  ;;  %v281_v4 = vld [vmem:[#allocation6] sm:$0xff]  ;;  %v299_v7 = vld [vmem:[#allocation6 + $0x90] sm:$0xff]  ;;  %vm330_vm1 = vcmask 1043456   ;;  %vm1164_vm2 = vmmov 1   ;;  %vm326_vm4 = vcmask 359424  }
 0x126   : > { %v722_v5 = vpack.c.bf16 %v298_v3, %v297_v2  ;;  %v282_v6 = vld [vmem:[#allocation6 + $0x8] sm:$0xff]  ;;  %v300_v8 = vld [vmem:[#allocation6 + $0x98] sm:$0xff]  ;;  %v283_v11 = vld [vmem:[#allocation6 + $0x10] sm:$0xff]  ;;  %s1557_s13 = sld [smem:[#allocation30_spill]]  ;;  %s1558_s30 = sld [smem:[#allocation35_spill]] }
 0x127   : > { %v724_v9 = vpack.c.bf16 %v282_v6, %v281_v4  ;;  %v726_v10 = vpack.c.bf16 %v300_v8, %v299_v7  ;;  %v284_v12 = vld [vmem:[#allocation6 + $0x18] sm:$0xff]  ;;  %v301_v13 = vld [vmem:[#allocation6 + $0xa0] sm:$0xff]  ;;  %v302_v14 = vld [vmem:[#allocation6 + $0xa8] sm:$0xff]  ;;  %s1559_s24 = sld [smem:[#allocation38_spill]]  ;;  %s654_s25 = sshll.u32 %s1224_s0, 7 }
 0x128   : > { %723 = vmatprep.subr.bf16.mxu0 %v722_v5  ;;  %v728_v15 = vpack.c.bf16 %v284_v12, %v283_v11  ;;  %v730_v16 = vpack.c.bf16 %v302_v14, %v301_v13  ;;  %v285_v17 = vld [vmem:[#allocation6 + $0x20] sm:$0xff]  ;;  %v286_v18 = vld [vmem:[#allocation6 + $0x28] sm:$0xff]  ;;  %v303_v19 = vld [vmem:[#allocation6 + $0xb0] sm:$0xff]  ;;  %s489_s4 = sshll.u32 %s142_s10, 4  ;;  %s1560_s8 = sld [smem:[#allocation39_spill]]  ;;  %s1475_s4 = int_to_ptr.vmem [resolvable:$true] %s489_s4 }
 0x129   : > { %725 = vmatpush3.bf16.msra.mxu0 %v724_v9  ;;  %v304_v20 = vld [vmem:[#allocation6 + $0xb8] sm:$0xff]  ;;  %v732_v21 = vpack.c.bf16 %v286_v18, %v285_v17  ;;  %v287_v22 = vld [vmem:[#allocation6 + $0x30] sm:$0xff]  ;;  %v313_v25 = vld [vmem:[#allocation6 + $0x100] sm:$0xff]  ;;  %s1061_s5 = scalar_lea.vmem %s1475_s4, 128  ;;  %s1165_s0 = smov [#allocation9]  }
 0x12a   : > { %727 = vmatprep.subr.bf16.mxu0 %v726_v10  ;;  %v734_v23 = vpack.c.bf16 %v304_v20, %v303_v19  ;;  %v288_v24 = vld [vmem:[#allocation6 + $0x38] sm:$0xff]  ;;  %v314_v26 = vld [vmem:[#allocation6 + $0x108] sm:$0xff]  ;;  %v305_v27 = vld [vmem:[#allocation6 + $0xc0] sm:$0xff]  ;;  %p1062_p4 = scmp.ne.s32.totalorder %s1475_s4, %s1061_s5  ;;  %s1065_s21 = sshll.u32 %s1165_s0, 4  ;;  %s1066_s21 = int_to_ptr.vmem [resolvable:$false] %s1065_s21 }
 0x12b   : > { %v306_v28 = vld [vmem:[#allocation6 + $0xc8] sm:$0xff]  ;;  %v755_v29 = vpack.c.bf16 %v314_v26, %v313_v25  ;;  %v315_v30 = vld [vmem:[#allocation6 + $0x110] sm:$0xff]  ;;  %v316_v31 = vld [vmem:[#allocation6 + $0x118] sm:$0xff]  ;;  %v736_v32 = vpack.c.bf16 %v288_v24, %v287_v22  ;;  %s1067_s17 = scalar_lea.vmem %s1066_s21, 256  ;;  %p1068_p12 = scmp.lt.s32.totalorder %s1475_s4, %s1066_s21 }
 0x12c   : > { %v289_v33 = vld [vmem:[#allocation6 + $0x40] sm:$0xff]  ;;  %v758_v34 = vpack.c.bf16 %v316_v31, %v315_v30  ;;  %v279_v35 = vld [vmem:[#allocation2 + $0x8] sm:$0xff]  ;;  %v738_v36 = vpack.c.bf16 %v306_v28, %v305_v27  ;;  %v290_v37 = vld [vmem:[#allocation6 + $0x48] sm:$0xff]  ;;  %s1561_s6 = sand.u32 1, %s1557_s13   ;;  %p1562_p3 = scmp.ne.s32.totalorder %s1558_s30, 0 }
 0x12d   : > { %729 = vmatpush3.bf16.msra.mxu0 %v728_v15  ;;  %756 = vmatpush3.bf16.msra.mxu1 %v755_v29  ;;  %v317_v38 = vld [vmem:[#allocation6 + $0x120] sm:$0xff]  ;;  %v318_v39 = vld [vmem:[#allocation6 + $0x128] sm:$0xf]  ;;  %v307_v40 = vld [vmem:[#allocation6 + $0xd0] sm:$0xff]  ;;  %v740_v42 = vpack.c.bf16 %v290_v37, %v289_v33  ;;  %s476_s18 = scalar_lea.sflag [#allocation8], %s1561_s6  ;;  %p1069_p13 = scmp.lt.s32.totalorder %s1067_s17, %s1061_s5 }
 0x12e   : > { %731 = vmatprep.subr.bf16.mxu0 %v730_v16  ;;  %757 = vmatprep.subr.bf16.mxu1 %v1161_v0  ;;  %v308_v41 = vld [vmem:[#allocation6 + $0xd8] sm:$0xff]  ;;  %v761_v43 = vpack.c.bf16 %v318_v39, %v317_v38  ;;  %v291_v45 = vld [vmem:[#allocation6 + $0x50] sm:$0xff]  ;;  %vm762_vm3 = vmpackc.low %vm330_vm1, %vm1164_vm2  ;;  %s1473_s15 = scalar_lea.hbm %s1560_s8, %s654_s25  ;;  %p1063_p8 = pnand %p1062_p4, %p1562_p3 }
 0x12f   : > { %398 = vmatprep.mubr.f32.mxu0 %v279_v35  ;;  %v742_v44 = vpack.c.bf16 %v308_v41, %v307_v40  ;;  %v292_v46 = vld [vmem:[#allocation6 + $0x58] sm:$0xff]  ;;  %v309_v47 = vld [vmem:[#allocation6 + $0xe0] sm:$0xff]  ;;  %v310_v48 = vld [vmem:[#allocation6 + $0xe8] sm:$0xff]  ;;  %p1070_p1 = por %p1069_p13, %p1068_p12 }
 0x130   : > { %v744_v49 = vpack.c.bf16 %v292_v46, %v291_v45  ;;  %v280_v50 = vld [vmem:[#allocation2 + $0x10] sm:$0xff]  ;;  %v746_v51 = vpack.c.bf16 %v310_v48, %v309_v47  ;;  %v293_v52 = vld [vmem:[#allocation6 + $0x60] sm:$0xff]  ;;  %v294_v53 = vld [vmem:[#allocation6 + $0x68] sm:$0xff]  ;;  %p1064_p9 = pneg %p1063_p8 }
 0x131   : > { %733 = vmatpush3.bf16.msra.mxu0 %v732_v21  ;;  %759 = vmatpush3.bf16.msra.mxu1 %v758_v34  ;;  %v311_v54 = vld [vmem:[#allocation6 + $0xf0] sm:$0xff]  ;;  %v312_v55 = vld [vmem:[#allocation6 + $0xf8] sm:$0xff]  ;;  %v748_v56 = vpack.c.bf16 %v294_v53, %v293_v52  ;;  %v278_v61 = vld [vmem:[#allocation2] sm:$0xff] }
 0x132   : > { %735 = vmatprep.subr.bf16.mxu0 %v734_v23  ;;  %760 = vmatprep.subr.bf16.mxu1 %v1161_v0  ;;  %v750_v57 = vpack.c.bf16 %v312_v55, %v311_v54  ;;  %v295_v58 = vld [vmem:[#allocation6 + $0x70] sm:$0xff]  ;;  %v296_v59 = vld [vmem:[#allocation6 + $0x78] sm:$0xff]  ;;  %v650_v2 = vld [vmem:[%s1559_s24] ss:$0 sm:$0xff]  ;;  %p1071_p5 = pnand %p1070_p1, %p1064_p9 }
 0x133   : > { %v752_v60 = vpack.c.bf16 %v296_v59, %v295_v58 }
 0x135   : > { %737 = vmatpush3.bf16.msra.mxu0 %v736_v32  ;;  %763 = vmatpush3.bf16.msk.msra.mxu1 %vm762_vm3, %v761_v43 }
 0x136   : > { %739 = vmatprep.subr.bf16.mxu0 %v738_v36 }
 0x138   : > { %720 = vmatmul.mubr.msk.f32.vlgmr.msra.gmra.mrb[0].mxu1 %vm326_vm4, %v280_v50 }
 0x139   : > { %741 = vmatpush3.bf16.msra.mxu0 %v740_v42 }
 0x13a   : > { %743 = vmatprep.subr.bf16.mxu0 %v742_v44 }
 0x13d   : > { %745 = vmatpush3.bf16.msra.mxu0 %v744_v49 }
 0x13e   : > { %747 = vmatprep.subr.bf16.mxu0 %v746_v51 }
 0x141   : > { %749 = vmatpush3.bf16.msra.mxu0 %v748_v56 }
 0x142   : > { %751 = vmatprep.subr.bf16.mxu0 %v750_v57 }
 0x145   : > { %753 = vmatpush3.bf16.msra.mxu0 %v752_v60 }
 0x148   : > { %399 = vmatmul.mubr.f32.vlgmr.msra.gmra.mrb[0].mxu0 %v278_v61 }
 0x20b   : > { %v470_v62 = vpop.f32.mrb[0].mxu1 }
 0x20c   : > { %v721_v63 = vpop.f32.mrb[1].mxu1 }
 0x21b   : > { %v697_v0 = vpop.f32.mrb[0].mxu0 }
 0x21c   : > { %v698_v1 = vpop.f32.mrb[1].mxu0 }
 0x21d   : > { %v699_v3 = vadd.f32 %v698_v1, %v697_v0 }
 0x21f   : > { %v401_v4 = vadd.f32 %v699_v3, %v650_v2 }
 0x221   : > { %v471_v5 = vadd.f32 %v470_v62, %v401_v4 }
 0x223   : > { %474 = vst [vmem:[%s142_s10] sm:$0xff] %v471_v5 }
 0x224   : > { %1074 = shalt.err (!%p1071_p5)
}
 0x225   : > { %s1075_s11 = scalar_lea.hbm %s1473_s15, 128  ;;  %s1079_s16 = scalar_lea.hbm %s1560_s8, 256 }
 0x226   : > { %p1076_p6 = scmp.ne.s32.totalorder %s1473_s15, %s1075_s11  ;;  %p1080_p11 = scmp.lt.u32.totalorder %s1473_s15, %s1560_s8 }
 0x227   : > { %p1081_p0 = scmp.lt.u32.totalorder %s1079_s16, %s1075_s11  ;;  %p1083_p4 = scmp.lt.u32.totalorder %s1075_s11, %s1473_s15 }
 0x228   : > { %p1077_p7 = pnand %p1076_p6, %p1562_p3 }
 0x229   : > { %p1082_p2 = por %p1081_p0, %p1080_p11 }
 0x22a   : > { %p1078_p10 = pneg %p1077_p7 }
 0x22b   : > { %p1084_p8 = por %p1083_p4, %p1082_p2 }
 0x22d   : > { %p1085_p9 = pnand %p1084_p8, %p1078_p10 }
 0x22f   : > { %1088 = shalt.err (!%p1085_p9)
}
 0x230   : > { %768 = dma.vmem_to_hbm [thread:$0]  (%p1562_p3), %s1475_s4, 128, %s1473_s15, %s476_s18  }
 0x231 PF: > { %s1563_s3 = sld [smem:[#allocation32_spill]]  ;;  %s1564_s28 = sld [smem:[#allocation29_spill]] }
 0x232   : > { %s1565_s12 = sld [smem:[#allocation36_spill]] }
 0x237   : > { %p780_p12 = scmp.ge.s32.totalorder %s1563_s3, 2  ;;  %s501_s14 = sand.u32 1, %s1564_s28  }
 0x238   : > { %p1566_p13 = scmp.ne.s32.totalorder %s1565_s12, 0  ;;  %s502_s22 = scalar_lea.sflag [#allocation8], %s501_s14 }
 0x23a   : > { %p775_p1 = pnand %p780_p12, %p1566_p13 }
 0x23c   : > { %1128 = dma.done.wait (!%p775_p1), %s502_s22, 128  }
 0x23d   : > { %1130 = vsyncadd (!%p775_p1), %s502_s22, 4294967168  ;;  %s1567_s28 = sld [smem:[#allocation33_spill]]  ;;  %s1568_s25 = sld [smem:[#allocation30_spill]] }
 0x23e   : > { %s1569_s26 = sld [smem:[#allocation31_spill]]  ;;  %s1570_s27 = sld [smem:[#allocation34_spill]] }
 0x243   : > { %p19_p5 = scmp.ge.s32.totalorder %s1567_s28, 4  }
 0x245   :  { %21 = sbr.rel (!%p19_p5) target bundleno = 17 (0x11), region = 94 }
 0x24c   :  { %507 = vsyncpa [#allocation7], 1 }
 0x24d   :  { %509 = vsyncpa [#allocation7 + $0x1], 1 }
 0x24e   :  { %510 = vsyncpa [#allocation8], 1 }
 0x24f   :  { %512 = vsyncpa [#allocation8 + $0x1], 1 }
 0x250   :  { %513 = vsyncmov [#allocation3] }
 0x253   :  { %s514_s23 = vpop.sfrf %513 }
 0x254   :  { %p657_p3 = scmp.ne.s32.totalorder %s514_s23, 0 }
 0x256   :  { %518 = shalt.err (%p657_p3)  }
 0x257   :  { %520 = vsyncmov [#allocation3 + $0x1] }
 0x25a   :  { %s521_s10 = vpop.sfrf %520 }
 0x25b   :  { %p658_p6 = scmp.ne.s32.totalorder %s521_s10, 0 }
 0x25d   :  { %525 = shalt.err (%p658_p6)  }
 0x25e   :  { %527 = vsyncmov [#allocation3 + $0x2] }
 0x261   :  { %s528_s13 = vpop.sfrf %527 }
 0x262   :  { %p659_p7 = scmp.ne.s32.totalorder %s528_s13, 0 }
 0x264   :  { %532 = shalt.err (%p659_p7)  }
 0x265   :  { %534 = vsyncmov [#allocation3 + $0x3] }
 0x268   :  { %s535_s30 = vpop.sfrf %534 }
 0x269   :  { %p660_p10 = scmp.ne.s32.totalorder %s535_s30, 0 }
 0x26b   :  { %539 = shalt.err (%p660_p10)  }
 0x26c   :  { %541 = vsyncmov [#allocation3 + $0x4] }
 0x26f   :  { %s542_s1 = vpop.sfrf %541 }
 0x270   :  { %p661_p11 = scmp.ne.s32.totalorder %s542_s1, 0 }
 0x272   :  { %546 = shalt.err (%p661_p11)  }
 0x273   :  { %548 = vsyncmov [#allocation3 + $0x5] }
 0x276   :  { %s549_s9 = vpop.sfrf %548 }
 0x277   :  { %p662_p0 = scmp.ne.s32.totalorder %s549_s9, 0 }
 0x279   :  { %553 = shalt.err (%p662_p0)  }
 0x27a   :  { %555 = vsyncmov [#allocation3 + $0x6] }
 0x27d   :  { %s556_s27 = vpop.sfrf %555 }
 0x27e   :  { %p663_p2 = scmp.ne.s32.totalorder %s556_s27, 0 }
 0x280   :  { %560 = shalt.err (%p663_p2)  }
 0x281   :  { %562 = vsyncmov [#allocation3 + $0x7] }
 0x284   :  { %s563_s24 = vpop.sfrf %562 }
 0x285   :  { %p664_p4 = scmp.ne.s32.totalorder %s563_s24, 0 }
 0x287   :  { %567 = shalt.err (%p664_p4)  }

</bundles_post_ra>
